<compile_context>
chip_gen: v7x
topology: tpu7x:2x2x1
jax: 0.10.0
libtpu: 0.0.40
codegen_flags: <defaults>
</compile_context>

<pallas_src>
import functools

import jax
import jax.numpy as jnp
from jax.experimental import pallas as pl
from jax.experimental.pallas import tpu as pltpu

_EPS = 1e-6  # matches torch.nn.functional.pairwise_distance default eps


def _chip_config():
    """Return (per-input tile budget bytes, scoped VMEM limit bytes)."""
    try:
        kind = jax.devices()[0].device_kind.lower()
    except Exception:
        kind = ""
    if ("v5" in kind) or ("v6" in kind):
        # 128 MiB physical VMEM: bigger tiles, fewer grid steps.
        return 8 * 1024 * 1024, 64 * 1024 * 1024
    # v7x (64 MiB physical per TC) or unknown: stay under the 32 MiB scope.
    return 6 * 1024 * 1024, 32 * 1024 * 1024


def _pick_tile_rows(B, D, itemsize, budget_bytes, tile_rows=None):
    """Rows per batch tile, aligned to the dtype's sublane packing."""
    sub = max(8, 32 // itemsize)  # 8 for f32, 16 for bf16, 32 for int8/fp8
    if tile_rows is not None:
        tb = min(int(tile_rows), B)
    else:
        tb = min(B, max(sub, budget_bytes // max(1, D * itemsize)))
    if tb >= B:
        return B                          # single full-batch tile (full dims are legal)
    align = 128 if tb >= 128 else sub     # 128-row tiles keep the target block lane-dense
    return max(sub, (tb // align) * align)


def _contrastive_kernel(margin_ref, x1_ref, x2_ref, t_ref, out_ref, *, B, TB, NT):
    """Accumulate the per-tile loss sum into a per-core partial-sum block."""
    c = pl.program_id(0)   # TensorCore split ("parallel")
    i = pl.program_id(1)   # batch-tile sweep ("arbitrary" reduction)

    @pl.when(i == 0)
    def _init():
        out_ref[...] = jnp.zeros_like(out_ref)

    # Upcast in-kernel so HBM traffic stays in the native (possibly bf16) dtype.
    x1 = x1_ref[...].astype(jnp.float32)
    x2 = x2_ref[...].astype(jnp.float32)

    diff = x1 - x2 + _EPS                                   # torch adds eps per element
    sq = jnp.sum(diff * diff, axis=-1, keepdims=True)       # (TB, 1) = d^2
    dist = jnp.sqrt(sq)                                     # euclidean distance
    margin = margin_ref[0]
    hinge = jnp.maximum(margin - dist, 0.0)
    hsq = hinge * hinge                                     # (TB, 1)

    # Mask rows past the true batch size (last tile may be partial; the padded
    # region of the edge block holds unspecified data, possibly NaN/Inf, which
    # the select discards).
    row0 = (c * NT + i) * TB
    rows = row0 + jax.lax.broadcasted_iota(jnp.int32, (TB, 1), 0)
    valid = rows < B
    sq = jnp.where(valid, sq, 0.0)
    hsq = jnp.where(valid, hsq, 0.0)

    # Lane-dense target row ((1, 1, TB) block -> (1, TB)); upcast in-kernel.
    t_row = t_ref[...].reshape(1, TB).astype(jnp.float32)
    u_row = 1.0 - t_row

    # Weighted batch reduction on the MXU (idle in this HBM-bound kernel):
    #   sum_r (1 - t_r) * sq_r   +   sum_r t_r * hinge_r^2
    # LHS broadcast to 8 sublanes / RHS to 128 lanes keeps shapes MXU-native;
    # every element of `part` carries the same per-tile partial sum.  This
    # also removes the old per-step cross-sublane scalar fold from the loop.
    sq_b = jnp.broadcast_to(sq, (TB, 128))
    hsq_b = jnp.broadcast_to(hsq, (TB, 128))
    u8 = jnp.broadcast_to(u_row, (8, TB))
    t8 = jnp.broadcast_to(t_row, (8, TB))
    part = (jnp.dot(u8, sq_b, preferred_element_type=jnp.float32)
            + jnp.dot(t8, hsq_b, preferred_element_type=jnp.float32))   # (8, 128)
    out_ref[...] += part.reshape(1, 8, 128)


def contrastive_loss(output1, output2, target, margin=1.0, *, tile_rows=None):
    """Pallas TPU implementation of ContrastiveLoss.forward.

    output1, output2: (B, D) arrays (any float dtype; kept native through DMA)
    target:           (B,) array (0 = similar pair, 1 = dissimilar pair)
    returns: scalar float32 loss
    """
    B, D = output1.shape
    itemsize = jnp.dtype(output1.dtype).itemsize
    tile_budget, vmem_limit = _chip_config()

    TB = _pick_tile_rows(B, D, itemsize, tile_budget, tile_rows)
    NTOT = pl.cdiv(B, TB)                 # total batch tiles
    # Split across the 2 TensorCores (v7x) only when it wastes nothing.
    NC = 2 if (NTOT >= 2 and NTOT % 2 == 0) else 1
    NT = NTOT // NC                       # tiles per core (exact, no clamping needed)

    # Lane-dense target: pad the batch to NTOT*TB rows and expose it as
    # (NTOT, 1, TB) so each grid step streams a full-lane (1, 1, TB) block.
    # Kept in the native dtype; upcast happens inside the kernel.
    t_flat = target.reshape(-1)
    pad = NTOT * TB - B
    if pad:
        t_flat = jnp.pad(t_flat, (0, pad))
    t3d = t_flat.reshape(NTOT, 1, TB)

    m1d = jnp.asarray([margin], dtype=jnp.float32)
    kernel = functools.partial(_contrastive_kernel, B=B, TB=TB, NT=NT)

    cost = pl.CostEstimate(
        flops=4 * B * D + 16 * B + NTOT * 2 * 8 * TB * 128,
        transcendentals=B,                                   # one sqrt per row
        bytes_accessed=(2 * B * D * itemsize
                        + NTOT * TB * jnp.dtype(target.dtype).itemsize
                        + NC * 8 * 128 * 4 + 4),
    )

    out = pl.pallas_call(
        kernel,
        out_shape=jax.ShapeDtypeStruct((NC, 8, 128), jnp.float32),
        grid=(NC, NT),
        in_specs=[
            pl.BlockSpec(memory_space=pltpu.MemorySpace.SMEM),           # margin scalar
            pl.BlockSpec((TB, D), lambda c, i: (c * NT + i, 0)),         # output1
            pl.BlockSpec((TB, D), lambda c, i: (c * NT + i, 0)),         # output2
            pl.BlockSpec((1, 1, TB), lambda c, i: (c * NT + i, 0, 0)),   # target (lane-dense)
        ],
        out_specs=pl.BlockSpec((1, 8, 128), lambda c, i: (c, 0, 0)),     # per-core partial sums
        compiler_params=pltpu.CompilerParams(
            dimension_semantics=("parallel", "arbitrary"),
            vmem_limit_bytes=vmem_limit,
        ),
        cost_estimate=cost,
    )(m1d, output1, output2, t3d)

    # Combine the per-core partial sums; divide by the true batch size.
    return jnp.sum(out[:, 0, 0]) / jnp.float32(B)


def _reference(output1, output2, target, margin=1.0):
    # Pure-JAX reference mirroring the PyTorch formula (sqrt then square).
    d = jnp.sqrt(jnp.sum((output1.astype(jnp.float32)
                          - output2.astype(jnp.float32) + _EPS) ** 2, axis=-1))
    t = target.astype(jnp.float32)
    return jnp.mean((1.0 - t) * d**2 + t * jnp.maximum(margin - d, 0.0) ** 2)


if __name__ == "__main__":
    key = jax.random.PRNGKey(0)
    keys = jax.random.split(key, 9)

    def _check(o1, o2, tgt, margin, **kw):
        loss = contrastive_loss(o1, o2, tgt, margin=margin, **kw)
        jax.block_until_ready(loss)
        ref = _reference(o1, o2, tgt, margin=margin)
        assert jnp.allclose(loss, ref, rtol=1e-5, atol=1e-5), (loss, ref)

    # Case 1: single full-batch tile (small demo shape consistent with the module).
    B, D = 8, 32
    _check(jax.random.normal(keys[0], (B, D), dtype=jnp.float32),
           jax.random.normal(keys[1], (B, D), dtype=jnp.float32),
           jax.random.bernoulli(keys[2], 0.5, (B,)).astype(jnp.float32),
           1.0)

    # Case 2: odd tile count -> NC=1 path with a masked partial edge tile.
    B2, D2 = 20, 32
    _check(jax.random.normal(keys[3], (B2, D2), dtype=jnp.float32),
           jax.random.normal(keys[4], (B2, D2), dtype=jnp.float32),
           jax.random.bernoulli(keys[5], 0.5, (B2,)).astype(jnp.float32),
           1.0, tile_rows=8)

    # Case 3: even tile count -> two per-core partial sums (NC=2) path.
    B3, D3 = 32, 32
    _check(jax.random.normal(keys[6], (B3, D3), dtype=jnp.float32),
           jax.random.normal(keys[7], (B3, D3), dtype=jnp.float32),
           jax.random.bernoulli(keys[8], 0.5, (B3,)).astype(jnp.float32),
           1.0, tile_rows=8)

    print("KERNEL_OK")
</pallas_src>

<mosaic_0001>
module attributes {stable_mosaic.version = 11 : i64} {
  func.func @_contrastive_kernel(%arg0: i32, %arg1: i32, %arg2: memref<1xf32, #tpu.memory_space<smem>>, %arg3: memref<8x32xf32, #tpu.memory_space<vmem>>, %arg4: memref<8x32xf32, #tpu.memory_space<vmem>>, %arg5: memref<1x1x8xf32, #tpu.memory_space<vmem>>, %arg6: memref<1x8x128xf32, #tpu.memory_space<vmem>>) attributes {dimension_semantics = [#tpu.dimension_semantics<parallel>, #tpu.dimension_semantics<arbitrary>], iteration_bounds = array<i64: 1, 1>, scalar_prefetch = 0 : i64, scratch_operands = 0 : i64, tpu.core_type = #tpu.core_type<tc>, window_params = [{transform_indices = @transform_0, window_bounds = array<i64: 1>}, {transform_indices = @transform_1, window_bounds = array<i64: 8, 32>}, {transform_indices = @transform_2, window_bounds = array<i64: 8, 32>}, {transform_indices = @transform_3, window_bounds = array<i64: 1, 1, 8>}, {transform_indices = @transform_4, window_bounds = array<i64: 1, 8, 128>}]} {
    %c0_i32 = arith.constant 0 : i32
    %0 = arith.cmpi eq, %arg1, %c0_i32 : i32
    %1 = arith.extui %0 : i1 to i32
    %c0_i32_0 = arith.constant 0 : i32
    %2 = arith.cmpi ne, %1, %c0_i32_0 : i32
    scf.if %2 {
      %cst_22 = arith.constant 0.000000e+00 : f32
      %49 = vector.broadcast %cst_22 : f32 to vector<1x8x128xf32>
      %c0_23 = arith.constant 0 : index
      %c0_24 = arith.constant 0 : index
      %c0_25 = arith.constant 0 : index
      %50 = vector.load %arg6[%c0_23, %c0_24, %c0_25] : memref<1x8x128xf32, #tpu.memory_space<vmem>>, vector<1x8x128xf32>
      tpu.vector_store %arg6[%c0_23, %c0_24, %c0_25], %49 {strides = array<i32>} : memref<1x8x128xf32, #tpu.memory_space<vmem>>, vector<1x8x128xf32>,
    } else {
    }
    %c0 = arith.constant 0 : index
    %c0_1 = arith.constant 0 : index
    %3 = vector.load %arg3[%c0, %c0_1] : memref<8x32xf32, #tpu.memory_space<vmem>>, vector<8x32xf32>
    %c0_2 = arith.constant 0 : index
    %c0_3 = arith.constant 0 : index
    %4 = vector.load %arg4[%c0_2, %c0_3] : memref<8x32xf32, #tpu.memory_space<vmem>>, vector<8x32xf32>
    %5 = arith.subf %3, %4 : vector<8x32xf32>
    %cst = arith.constant 9.99999997E-7 : f32
    %6 = vector.broadcast %cst : f32 to vector<8x32xf32>
    %7 = arith.addf %5, %6 : vector<8x32xf32>
    %8 = arith.mulf %7, %7 : vector<8x32xf32>
    %cst_4 = arith.constant dense<0.000000e+00> : vector<8xf32>
    %9 = vector.multi_reduction <add>, %8, %cst_4 [1] : vector<8x32xf32> to vector<8xf32>
    %10 = vector.shape_cast %9 : vector<8xf32> to vector<8x1xf32>
    %11 = math.sqrt %10 : vector<8x1xf32>
    %c0_5 = arith.constant 0 : index
    %12 = memref.load %arg2[%c0_5] : memref<1xf32, #tpu.memory_space<smem>>
    %13 = vector.broadcast %12 : f32 to vector<8x1xf32>
    %14 = arith.subf %13, %11 : vector<8x1xf32>
    %cst_6 = arith.constant 0.000000e+00 : f32
    %15 = vector.broadcast %cst_6 : f32 to vector<8x1xf32>
    %16 = arith.maximumf %14, %15 : vector<8x1xf32>
    %17 = arith.mulf %16, %16 : vector<8x1xf32>
    %c1_i32 = arith.constant 1 : i32
    %18 = arith.muli %arg0, %c1_i32 : i32
    %19 = arith.addi %18, %arg1 : i32
    %c8_i32 = arith.constant 8 : i32
    %20 = arith.muli %19, %c8_i32 : i32
    %21 = tpu.iota {dimensions = array<i32: 0>} : vector<8x1xi32>
    %22 = vector.broadcast %20 : i32 to vector<8x1xi32>
    %23 = arith.addi %22, %21 : vector<8x1xi32>
    %c8_i32_7 = arith.constant 8 : i32
    %24 = vector.broadcast %c8_i32_7 : i32 to vector<8x1xi32>
    %25 = arith.cmpi slt, %23, %24 : vector<8x1xi32>
    %cst_8 = arith.constant 0.000000e+00 : f32
    %26 = vector.broadcast %cst_8 : f32 to vector<8x1xf32>
    %27 = arith.select %25, %10, %26 : vector<8x1xi1>, vector<8x1xf32>
    %cst_9 = arith.constant 0.000000e+00 : f32
    %28 = vector.broadcast %cst_9 : f32 to vector<8x1xf32>
    %29 = arith.select %25, %17, %28 : vector<8x1xi1>, vector<8x1xf32>
    %c0_10 = arith.constant 0 : index
    %c0_11 = arith.constant 0 : index
    %c0_12 = arith.constant 0 : index
    %30 = vector.load %arg5[%c0_10, %c0_11, %c0_12] : memref<1x1x8xf32, #tpu.memory_space<vmem>>, vector<1x1x8xf32>
    %31 = vector.shape_cast %30 : vector<1x1x8xf32> to vector<1x8xf32>
    %cst_13 = arith.constant 1.000000e+00 : f32
    %32 = vector.broadcast %cst_13 : f32 to vector<1x8xf32>
    %33 = arith.subf %32, %31 : vector<1x8xf32>
    %34 = vector.shape_cast %27 : vector<8x1xf32> to vector<8x1xf32>
    %35 = vector.broadcast %34 : vector<8x1xf32> to vector<8x128xf32>
    %36 = vector.shape_cast %29 : vector<8x1xf32> to vector<8x1xf32>
    %37 = vector.broadcast %36 : vector<8x1xf32> to vector<8x128xf32>
    %38 = vector.shape_cast %33 : vector<1x8xf32> to vector<1x8xf32>
    %39 = vector.broadcast %38 : vector<1x8xf32> to vector<8x8xf32>
    %40 = vector.shape_cast %31 : vector<1x8xf32> to vector<1x8xf32>
    %41 = vector.broadcast %40 : vector<1x8xf32> to vector<8x8xf32>
    %cst_14 = arith.constant dense<0.000000e+00> : vector<8x128xf32>
    %42 = tpu.matmul %39, %35, %cst_14 {dimension_numbers = #tpu.dot_dimension_numbers<[1], [0], [0], [1], [0, 0, 1, 1], [], []>} : vector<8x8xf32>, vector<8x128xf32>, vector<8x128xf32> -> vector<8x128xf32>
    %cst_15 = arith.constant dense<0.000000e+00> : vector<8x128xf32>
    %43 = tpu.matmul %41, %37, %cst_15 {dimension_numbers = #tpu.dot_dimension_numbers<[1], [0], [0], [1], [0, 0, 1, 1], [], []>} : vector<8x8xf32>, vector<8x128xf32>, vector<8x128xf32> -> vector<8x128xf32>
    %44 = arith.addf %42, %43 : vector<8x128xf32>
    %c0_16 = arith.constant 0 : index
    %c0_17 = arith.constant 0 : index
    %c0_18 = arith.constant 0 : index
    %45 = vector.load %arg6[%c0_16, %c0_17, %c0_18] : memref<1x8x128xf32, #tpu.memory_space<vmem>>, vector<1x8x128xf32>
    %46 = vector.shape_cast %44 : vector<8x128xf32> to vector<1x8x128xf32>
    %47 = arith.addf %45, %46 : vector<1x8x128xf32>
    %c0_19 = arith.constant 0 : index
    %c0_20 = arith.constant 0 : index
    %c0_21 = arith.constant 0 : index
    %48 = vector.load %arg6[%c0_19, %c0_20, %c0_21] : memref<1x8x128xf32, #tpu.memory_space<vmem>>, vector<1x8x128xf32>
    tpu.vector_store %arg6[%c0_19, %c0_20, %c0_21], %47 {strides = array<i32>} : memref<1x8x128xf32, #tpu.memory_space<vmem>>, vector<1x8x128xf32>,
    return
  }
  func.func @transform_0(%arg0: i32, %arg1: i32) -> i32 {
    %c0_i32 = arith.constant 0 : i32
    %c0_i32_0 = arith.constant 0 : i32
    return %c0_i32 : i32
  }
  func.func @transform_1(%arg0: i32, %arg1: i32) -> (i32, i32) {
    %c1_i32 = arith.constant 1 : i32
    %0 = arith.muli %arg0, %c1_i32 : i32
    %1 = arith.addi %0, %arg1 : i32
    %c0_i32 = arith.constant 0 : i32
    %c0_i32_0 = arith.constant 0 : i32
    return %1, %c0_i32 : i32, i32
  }
  func.func @transform_2(%arg0: i32, %arg1: i32) -> (i32, i32) {
    %c1_i32 = arith.constant 1 : i32
    %0 = arith.muli %arg0, %c1_i32 : i32
    %1 = arith.addi %0, %arg1 : i32
    %c0_i32 = arith.constant 0 : i32
    %c0_i32_0 = arith.constant 0 : i32
    return %1, %c0_i32 : i32, i32
  }
  func.func @transform_3(%arg0: i32, %arg1: i32) -> (i32, i32, i32) {
    %c1_i32 = arith.constant 1 : i32
    %0 = arith.muli %arg0, %c1_i32 : i32
    %1 = arith.addi %0, %arg1 : i32
    %c0_i32 = arith.constant 0 : i32
    %c0_i32_0 = arith.constant 0 : i32
    %c0_i32_1 = arith.constant 0 : i32
    return %1, %c0_i32, %c0_i32_0 : i32, i32, i32
  }
  func.func @transform_4(%arg0: i32, %arg1: i32) -> (i32, i32, i32) {
    %c0_i32 = arith.constant 0 : i32
    %c0_i32_0 = arith.constant 0 : i32
    %c0_i32_1 = arith.constant 0 : i32
    return %arg0, %c0_i32, %c0_i32_0 : i32, i32, i32
  }
}

</mosaic_0001>

<bundles_post_ra>
// kernel: tpu_custom_call.1
= control target key start
LH: loop header
LB: loop body
LE: loop exit
PB: predicated region body
PF: predicated region fallthrough
CT: control target
= control target key end

     0   :  { %10 = vsyncpa [#allocation4], 0  ;;  %s448_s0 = inlined_call_operand.<no memory space> [shape: f32[1], index: 0, kind: input, shape index: {}]   ;;  %s449_s1 = inlined_call_operand.hbm [shape: f32[8,32], index: 1, kind: input, shape index: {}]   ;;  %s450_s2 = inlined_call_operand.hbm [shape: f32[8,32], index: 2, kind: input, shape index: {}]   ;;  %s451_s3 = inlined_call_operand.vmem [shape: f32[1,1,8], index: 3, kind: input, shape index: {}]   ;;  %s452_s4 = inlined_call_operand.hbm [shape: f32[1,8,128], index: 4, kind: output, shape index: {}]  }
   0x1   :  { %11 = vsyncpa [#allocation7], 0 }
   0x2   :  { %12 = vsyncpa [#allocation5], 0  ;;  %s374_s15 = smov [#allocation3]   ;;  %s375_s17 = smov [#allocation6]  }
   0x3   :  { %s24_s16 = sshll.u32 %s374_s15, 4  ;;  %s37_s18 = sshll.u32 %s375_s17, 4  ;;  %s25_s16 = int_to_ptr.vmem [resolvable:$true] %s24_s16  ;;  %s38_s18 = int_to_ptr.vmem [resolvable:$true] %s37_s18 }
   0x4   :  { %s302_s21 = scalar_lea.hbm %s449_s1, 128 }
   0x5   :  { %p303_p0 = scmp.ne.s32.totalorder %s449_s1, %s302_s21  ;;  %p306_p1 = scmp.lt.u32.totalorder %s302_s21, %s449_s1 }
   0x7   :  { %p308_p2 = pnand %p306_p1, %p303_p0 }
   0x9   :  { %311 = shalt.err (!%p308_p2)
}
   0xa   :  { %s312_s26 = scalar_lea.vmem %s25_s16, 128  ;;  %p317_p4 = scmp.lt.s32.totalorder %s25_s16, %s25_s16 }
   0xb   :  { %p313_p3 = scmp.ne.s32.totalorder %s25_s16, %s312_s26  ;;  %p318_p5 = scmp.lt.s32.totalorder %s312_s26, %s312_s26 }
   0xd   :  { %p319_p6 = por %p318_p5, %p317_p4 }
   0xf   :  { %p320_p7 = pnand %p319_p6, %p313_p3 }
  0x11   :  { %323 = shalt.err (!%p320_p7)
}
  0x12   :  { %27 = dma.hbm_to_vmem [thread:$0]  %s449_s1, 128, %s25_s16, [#allocation4]  }
  0x13   :  { %s324_s5 = scalar_lea.hbm %s450_s2, 128 }
  0x14   :  { %p325_p8 = scmp.ne.s32.totalorder %s450_s2, %s324_s5  ;;  %p328_p9 = scmp.lt.u32.totalorder %s324_s5, %s450_s2 }
  0x16   :  { %p330_p10 = pnand %p328_p9, %p325_p8 }
  0x18   :  { %333 = shalt.err (!%p330_p10)
}
  0x19   :  { %s334_s10 = scalar_lea.vmem %s38_s18, 128  ;;  %p339_p12 = scmp.lt.s32.totalorder %s38_s18, %s38_s18 }
  0x1a   :  { %p335_p11 = scmp.ne.s32.totalorder %s38_s18, %s334_s10  ;;  %p340_p13 = scmp.lt.s32.totalorder %s334_s10, %s334_s10 }
  0x1c   :  { %p341_p0 = por %p340_p13, %p339_p12 }
  0x1e   :  { %p342_p1 = pnand %p341_p0, %p335_p11 }
  0x20   :  { %345 = shalt.err (!%p342_p1)
}
  0x21   :  { %40 = dma.hbm_to_vmem [thread:$0]  %s450_s2, 128, %s38_s18, [#allocation7]  }
  0x22   :  { %368 = dma.done.wait [#allocation4], 128  }
  0x23   :  { %369 = vsyncadd [#allocation4], 4294967168 }
  0x24   :  { %370 = dma.done.wait [#allocation7], 128  }
  0x25   :  { %371 = vsyncadd [#allocation7], 4294967168  ;;  %v376_v0 = vmov 0.0   ;;  %v70_v1 = vld [vmem:[#allocation3] sm:$0xff]  ;;  %v71_v2 = vld [vmem:[#allocation6] sm:$0xff]  ;;  %vm75_vm0 = vcmask 261120   ;;  %v103_v7 = vlaneseq  ;;  %v87_v17 = vstv %s448_s0 }
  0x26   :  { %290 = vmatprep.subr.mxu1 %v376_v0  ;;  %285 = vmatprep.subr.mxu0 %v376_v0  ;;  %v72_v3 = vsub.f32 %v70_v1, %v71_v2  ;;  %vm377_vm1 = vmmov 0   ;;  %v100_v9 = vld [vmem:[%s451_s3] sm:$0x1]  ;;  %vm112_vm2 = vcmask 64512   ;;  %s378_s3 = smov [#allocation8]  }
  0x27   :  { %292 = vmatprep.mubr.msk.f32.mxu1 %vm377_vm1, %v376_v0  ;;  %287 = vmatprep.mubr.msk.f32.mxu0 %vm377_vm1, %v376_v0  ;;  %v104_v8 = vshrl.u32 %v103_v7, 7  ;;  %v101_v10 = vsub.f32 1.0, %v100_v9  ;;  %s266_s15 = sshll.u32 %s378_s3, 4  ;;  %s267_s15 = int_to_ptr.vmem [resolvable:$true] %s266_s15 }
  0x28   :  { %v73_v4 = vadd.f32 1e-06, %v72_v3  ;;  %s346_s0 = scalar_lea.vmem %s267_s15, 128  ;;  %p351_p3 = scmp.lt.s32.totalorder %s267_s15, %s267_s15 }
  0x29   :  { %v105_v11 = vsub.s32 0, %v104_v8  ;;  %p347_p2 = scmp.ne.s32.totalorder %s267_s15, %s346_s0  ;;  %p352_p4 = scmp.lt.s32.totalorder %s346_s0, %s346_s0 }
  0x2a   :  { %v74_v5 = vmul.f32 %v73_v4, %v73_v4 }
  0x2b   :  { %v106_v12 = vrot.slane %v101_v10, %v105_v11  ;;  %v111_v22 = vrot.slane %v100_v9, %v105_v11  ;;  %p353_p5 = por %p352_p4, %p351_p3 }
  0x2c   :  { %v76_v6 = vsel %vm75_vm0, %v74_v5, 0.0 }
  0x2d   :  { %77 = vadd.xlane.f32.xlu0 %v76_v6  ;;  %p354_p6 = pnand %p353_p5, %p347_p2 }
  0xba   :  { %v78_v13 = vpop.xlane.xlu0 %77 }
  0xbb   :  { %300 = vrsqrt.f32 %v78_v13  ;;  %291 = vmatpush3.msra.mxu1 %v78_v13  ;;  %vm81_vm3 = vcmp.eq.f32.partialorder %v78_v13, inf  ;;  %v84_v16 = vand.u32 2147483648, %v78_v13  ;;  %vm83_vm4 = vcmp.eq.f32.partialorder %v78_v13, 0.0 }
  0xbc   :  { %293 = vmatmul.mubr.msk.f32.vlgmr.msra.gmra.mrb[0].mxu1 %vm112_vm2, %v106_v12 }
  0xc5   :  { %v301_v14 = vpop.eup %300 }
  0xc6   :  { %v80_v15 = vmul.f32 %v301_v14, %v78_v13 }
  0xc8   :  { %v82_v18 = vsel %vm81_vm3, %v78_v13, %v80_v15 }
  0xc9   :  { %v85_v19 = vsel %vm83_vm4, %v84_v16, %v82_v18 }
  0xca   :  { %v88_v20 = vsub.f32 %v87_v17, %v85_v19 }
  0xcc   :  { %v89_v21 = vmax.f32 %v88_v20, 0.0 }
  0xce   :  { %v90_v23 = vmul.f32 %v89_v21, %v89_v21 }
  0xd0   :  { %286 = vmatpush3.msra.mxu0 %v90_v23 }
  0xd1   :  { %288 = vmatmul.mubr.msk.f32.vlgmr.msra.gmra.mrb[0].mxu0 %vm112_vm2, %v111_v22 }
 0x18f   :  { %v253_v24 = vpop.f32.mrb[0].mxu1 }
 0x190   :  { %v294_v25 = vpop.f32.mrb[1].mxu1 }
 0x1a4   :  { %v181_v26 = vpop.f32.mrb[0].mxu0 }
 0x1a5   :  { %v254_v27 = vadd.f32 %v253_v24, %v181_v26  ;;  %v289_v28 = vpop.f32.mrb[1].mxu0 }
 0x1a7   :  { %259 = vst [vmem:[#allocation8] sm:$0xff] %v254_v27 }
 0x1a8   :  { %357 = shalt.err (!%p354_p6)
}
 0x1a9   :  { %s358_s18 = scalar_lea.hbm %s452_s4, 128 }
 0x1aa   :  { %p359_p7 = scmp.ne.s32.totalorder %s452_s4, %s358_s18  ;;  %p362_p8 = scmp.lt.u32.totalorder %s358_s18, %s452_s4 }
 0x1ac   :  { %p364_p9 = pnand %p362_p8, %p359_p7 }
 0x1ae   :  { %367 = shalt.err (!%p364_p9)
}
 0x1af   :  { %269 = dma.vmem_to_hbm [thread:$0]  %s267_s15, 128, %s452_s4, [#allocation5]  }
 0x1b0   :  { %372 = dma.done.wait [#allocation5], 128  }
 0x1b1   :  { %373 = vsyncadd [#allocation5], 4294967168 }
 0x1b2   :  { %273 = vsyncpa [#allocation4], 1 }
 0x1b3   :  { %274 = vsyncpa [#allocation7], 1 }
 0x1b4   :  { %275 = vsyncpa [#allocation5], 1 }

</bundles_post_ra>
